<compile_context>
chip_gen: v7x
topology: tpu7x:2x2x1
jax: 0.10.0
libtpu: 0.0.40
codegen_flags: <defaults>
</compile_context>

<pallas_src>
import functools

import jax
import jax.numpy as jnp
from jax.experimental import pallas as pl
from jax.experimental.pallas import tpu as pltpu

_NEG_INF = -1e30


def _round_up(x, m):
    return ((x + m - 1) // m) * m


def _supcon_kernel(q_ref, k_ref, labq_ref, labk_ref, out_ref,
                   m_sc, l_sc, s_sc, n_sc,
                   *, temperature, base_temperature, batch):
    # q_ref: (tq, Dp)  anchor feature tile       (input dtype, fed to MXU as-is)
    # k_ref: (tk, Dp)  contrast feature tile
    # labq_ref: (tq, 1) int32, labk_ref: (1, tk) int32
    # out_ref: (tq, 1) f32 per-anchor loss (written on last contrast step)
    # scratch (all (tq,1) f32): m_sc running max, l_sc running sum-exp,
    #                           s_sc running sum(pos*sim), n_sc running num_pos
    qi = pl.program_id(0)
    ki = pl.program_id(1)

    @pl.when(ki == 0)
    def _():
        m_sc[...] = jnp.full(m_sc.shape, _NEG_INF, jnp.float32)
        l_sc[...] = jnp.zeros(l_sc.shape, jnp.float32)
        s_sc[...] = jnp.zeros(s_sc.shape, jnp.float32)
        n_sc[...] = jnp.zeros(n_sc.shape, jnp.float32)

    # Fold 1/temperature into the LHS operand (stays in the input dtype), then
    # contract last-dim vs last-dim -> no materialized transpose of features.
    inv_t = 1.0 / temperature
    q_s = q_ref[...] * inv_t
    sim = jax.lax.dot_general(
        q_s, k_ref[...],
        dimension_numbers=(((1,), (1,)), ((), ())),
        preferred_element_type=jnp.float32,
    )  # (tq, tk) f32

    tq, tk = sim.shape
    row_ids = qi * tq + jax.lax.broadcasted_iota(jnp.int32, (tq, tk), 0)
    col_ids = ki * tk + jax.lax.broadcasted_iota(jnp.int32, (tq, tk), 1)
    diag = row_ids == col_ids
    col_ok = col_ids < batch                       # mask out padded contrast cols
    contrast_ok = jnp.logical_and(col_ok, jnp.logical_not(diag))

    # Denominator: online logsumexp over valid (non-diagonal, non-padded) cols.
    masked = jnp.where(contrast_ok, sim, _NEG_INF)
    tile_max = jnp.max(masked, axis=1, keepdims=True)
    m_prev = m_sc[...]
    m_new = jnp.maximum(m_prev, tile_max)
    p = jnp.exp(masked - m_new)                    # masked entries underflow to 0
    l_sc[...] = jnp.exp(m_prev - m_new) * l_sc[...] + jnp.sum(p, axis=1, keepdims=True)
    m_sc[...] = m_new

    # Positives: same label, not self, not a padded column.
    pos = jnp.logical_and(labq_ref[...] == labk_ref[...], contrast_ok)
    s_sc[...] = s_sc[...] + jnp.sum(jnp.where(pos, sim, 0.0), axis=1, keepdims=True)
    n_sc[...] = n_sc[...] + jnp.sum(pos.astype(jnp.float32), axis=1, keepdims=True)

    @pl.when(ki == pl.num_programs(1) - 1)
    def _():
        lse = m_sc[...] + jnp.log(l_sc[...])                 # log(sum_j!=i exp(sim_ij))
        inv_n = pl.reciprocal(n_sc[...], approx=True)        # EUP slot
        mean_log_prob_pos = s_sc[...] * inv_n - lse          # sum(pos*log_prob)/n_pos
        out_ref[...] = (-(temperature / base_temperature)) * mean_log_prob_pos


def _choose_tile(B, tile_target):
    b8 = _round_up(B, 8)
    if b8 <= tile_target:
        tile = b8                                   # single tile == full (padded) batch
    else:
        tile = max(128, _round_up(min(tile_target, b8), 128))   # lane-legal tile
    return tile, _round_up(B, tile)


def supcon_loss(features, labels, temperature=0.07, base_temperature=0.07,
                tile_target=256):
    """features: [B, D] float (f32 or bf16), labels: [B] int. Returns scalar loss.

    tile_target=256 fits v7x's smaller VMEM; v6e/v5e can use 512 for fewer
    grid steps.
    """
    B, D = features.shape
    Dp = _round_up(max(D, 128), 128)            # zero-pad K dim: no-op for dot products
    tile, Bp = _choose_tile(B, tile_target)

    f = jnp.pad(features, ((0, Bp - B), (0, Dp - D)))
    lab = jnp.pad(labels.astype(jnp.int32).reshape(-1), (0, Bp - B),
                  constant_values=-1)           # sentinel; padded cols also gated by col_ok
    lab_col = lab.reshape(Bp, 1)
    lab_row = lab.reshape(1, Bp)

    n_tiles = Bp // tile
    kernel = functools.partial(
        _supcon_kernel,
        temperature=float(temperature),
        base_temperature=float(base_temperature),
        batch=B,
    )

    itemsize = jnp.dtype(f.dtype).itemsize
    cost = pl.CostEstimate(
        flops=int(2 * Bp * Bp * Dp),
        transcendentals=int(Bp * Bp + 3 * Bp),
        bytes_accessed=int(Bp * Dp * itemsize * (1 + n_tiles) + 3 * Bp * 4),
    )

    per_anchor = pl.pallas_call(
        kernel,
        out_shape=jax.ShapeDtypeStruct((Bp, 1), jnp.float32),
        grid_spec=pltpu.PrefetchScalarGridSpec(
            num_scalar_prefetch=0,
            grid=(n_tiles, n_tiles),
            in_specs=[
                pl.BlockSpec((tile, Dp), lambda qi, ki: (qi, 0)),   # anchor rows
                pl.BlockSpec((tile, Dp), lambda qi, ki: (ki, 0)),   # contrast rows
                pl.BlockSpec((tile, 1), lambda qi, ki: (qi, 0)),    # labels (column view)
                pl.BlockSpec((1, tile), lambda qi, ki: (0, ki)),    # labels (row view)
            ],
            out_specs=pl.BlockSpec((tile, 1), lambda qi, ki: (qi, 0)),
            scratch_shapes=[pltpu.VMEM((tile, 1), jnp.float32)] * 4,
        ),
        compiler_params=pltpu.CompilerParams(
            dimension_semantics=("parallel", "arbitrary"),
            vmem_limit_bytes=48 * 1024 * 1024,
        ),
        cost_estimate=cost,
    )(f, f, lab_col, lab_row)

    # Masked mean over the real anchors only (padded anchors may be NaN by design).
    valid = (jnp.arange(Bp) < B).reshape(Bp, 1)
    return jnp.sum(jnp.where(valid, per_anchor, 0.0)) / B


def _supcon_ref(features, labels, temperature=0.07, base_temperature=0.07):
    # pure-JAX reference matching the PyTorch forward (labels path)
    B = features.shape[0]
    f = features.astype(jnp.float32)
    lab = labels.reshape(-1, 1)
    mask = (lab == lab.T).astype(jnp.float32)
    sim = (f @ f.T) / temperature
    logits = sim - jnp.max(sim, axis=1, keepdims=True)
    logits_mask = 1.0 - jnp.eye(B, dtype=jnp.float32)
    mask = mask * logits_mask
    exp_logits = jnp.exp(logits) * logits_mask
    log_prob = logits - jnp.log(jnp.sum(exp_logits, axis=1, keepdims=True))
    mean_log_prob_pos = jnp.sum(mask * log_prob, axis=1) / jnp.sum(mask, axis=1)
    return jnp.mean(-(temperature / base_temperature) * mean_log_prob_pos)


if __name__ == "__main__":
    key = jax.random.PRNGKey(0)

    # ---- test 1: small batch (matches the module's expected [B, D] usage) ----
    B, D = 8, 32
    k1, k2 = jax.random.split(key)
    features = jax.random.normal(k1, (B, D), dtype=jnp.float32)
    features = features / jnp.linalg.norm(features, axis=1, keepdims=True)
    labels = jnp.array([0, 0, 1, 1, 0, 1, 0, 1], dtype=jnp.int32)

    loss = jax.block_until_ready(supcon_loss(features, labels))
    ref = _supcon_ref(features, labels)
    assert jnp.allclose(loss, ref, atol=2e-3, rtol=2e-3), (loss, ref)

    # ---- test 2: exercises B/D padding and the multi-tile online-logsumexp path ----
    B2, D2 = 160, 40
    f2 = jax.random.normal(k2, (B2, D2), dtype=jnp.float32)
    f2 = f2 / jnp.linalg.norm(f2, axis=1, keepdims=True)
    lab2 = (jnp.arange(B2) % 4).astype(jnp.int32)

    loss2 = jax.block_until_ready(supcon_loss(f2, lab2, tile_target=128))
    ref2 = _supcon_ref(f2, lab2)
    assert jnp.allclose(loss2, ref2, atol=2e-3, rtol=2e-3), (loss2, ref2)

    print("KERNEL_OK")
</pallas_src>

<mosaic_0001>
module attributes {stable_mosaic.version = 11 : i64} {
  func.func @_supcon_kernel(%arg0: i32, %arg1: i32, %arg2: memref<8x128xf32, #tpu.memory_space<vmem>>, %arg3: memref<8x128xf32, #tpu.memory_space<vmem>>, %arg4: memref<8x1xi32, #tpu.memory_space<vmem>>, %arg5: memref<1x8xi32, #tpu.memory_space<vmem>>, %arg6: memref<8x1xf32, #tpu.memory_space<vmem>>, %arg7: memref<8x1xf32, #tpu.memory_space<vmem>>, %arg8: memref<8x1xf32, #tpu.memory_space<vmem>>, %arg9: memref<8x1xf32, #tpu.memory_space<vmem>>, %arg10: memref<8x1xf32, #tpu.memory_space<vmem>>) attributes {dimension_semantics = [#tpu.dimension_semantics<parallel>, #tpu.dimension_semantics<arbitrary>], iteration_bounds = array<i64: 1, 1>, scalar_prefetch = 0 : i64, scratch_operands = 4 : i64, tpu.core_type = #tpu.core_type<tc>, window_params = [{transform_indices = @transform_0, window_bounds = array<i64: 8, 128>}, {transform_indices = @transform_1, window_bounds = array<i64: 8, 128>}, {transform_indices = @transform_2, window_bounds = array<i64: 8, 1>}, {transform_indices = @transform_3, window_bounds = array<i64: 1, 8>}, {transform_indices = @transform_4, window_bounds = array<i64: 8, 1>}]} {
    %c0_i32 = arith.constant 0 : i32
    %0 = arith.cmpi eq, %arg1, %c0_i32 : i32
    %1 = arith.extui %0 : i1 to i32
    %c0_i32_0 = arith.constant 0 : i32
    %2 = arith.cmpi ne, %1, %c0_i32_0 : i32
    scf.if %2 {
      %cst_36 = arith.constant -1.000000e+30 : f32
      %62 = vector.broadcast %cst_36 : f32 to vector<8x1xf32>
      %c0_37 = arith.constant 0 : index
      %c0_38 = arith.constant 0 : index
      %63 = vector.load %arg7[%c0_37, %c0_38] : memref<8x1xf32, #tpu.memory_space<vmem>>, vector<8x1xf32>
      tpu.vector_store %arg7[%c0_37, %c0_38], %62 {strides = array<i32>} : memref<8x1xf32, #tpu.memory_space<vmem>>, vector<8x1xf32>,
      %cst_39 = arith.constant 0.000000e+00 : f32
      %64 = vector.broadcast %cst_39 : f32 to vector<8x1xf32>
      %c0_40 = arith.constant 0 : index
      %c0_41 = arith.constant 0 : index
      %65 = vector.load %arg8[%c0_40, %c0_41] : memref<8x1xf32, #tpu.memory_space<vmem>>, vector<8x1xf32>
      tpu.vector_store %arg8[%c0_40, %c0_41], %64 {strides = array<i32>} : memref<8x1xf32, #tpu.memory_space<vmem>>, vector<8x1xf32>,
      %cst_42 = arith.constant 0.000000e+00 : f32
      %66 = vector.broadcast %cst_42 : f32 to vector<8x1xf32>
      %c0_43 = arith.constant 0 : index
      %c0_44 = arith.constant 0 : index
      %67 = vector.load %arg9[%c0_43, %c0_44] : memref<8x1xf32, #tpu.memory_space<vmem>>, vector<8x1xf32>
      tpu.vector_store %arg9[%c0_43, %c0_44], %66 {strides = array<i32>} : memref<8x1xf32, #tpu.memory_space<vmem>>, vector<8x1xf32>,
      %cst_45 = arith.constant 0.000000e+00 : f32
      %68 = vector.broadcast %cst_45 : f32 to vector<8x1xf32>
      %c0_46 = arith.constant 0 : index
      %c0_47 = arith.constant 0 : index
      %69 = vector.load %arg10[%c0_46, %c0_47] : memref<8x1xf32, #tpu.memory_space<vmem>>, vector<8x1xf32>
      tpu.vector_store %arg10[%c0_46, %c0_47], %68 {strides = array<i32>} : memref<8x1xf32, #tpu.memory_space<vmem>>, vector<8x1xf32>,
    } else {
    }
    %c0 = arith.constant 0 : index
    %c0_1 = arith.constant 0 : index
    %3 = vector.load %arg2[%c0, %c0_1] : memref<8x128xf32, #tpu.memory_space<vmem>>, vector<8x128xf32>
    %cst = arith.constant 14.2857141 : f32
    %4 = vector.broadcast %cst : f32 to vector<8x128xf32>
    %5 = arith.mulf %3, %4 : vector<8x128xf32>
    %c0_2 = arith.constant 0 : index
    %c0_3 = arith.constant 0 : index
    %6 = vector.load %arg3[%c0_2, %c0_3] : memref<8x128xf32, #tpu.memory_space<vmem>>, vector<8x128xf32>
    %cst_4 = arith.constant dense<0.000000e+00> : vector<8x8xf32>
    %7 = tpu.matmul %5, %6, %cst_4 {dimension_numbers = #tpu.dot_dimension_numbers<[1], [1], [0], [0], [0, 0, 1, 0], [], []>} : vector<8x128xf32>, vector<8x128xf32>, vector<8x8xf32> -> vector<8x8xf32>
    %c8_i32 = arith.constant 8 : i32
    %8 = arith.muli %arg0, %c8_i32 : i32
    %9 = tpu.iota {dimensions = array<i32: 0>} : vector<8x8xi32>
    %10 = vector.broadcast %8 : i32 to vector<8x8xi32>
    %11 = arith.addi %10, %9 : vector<8x8xi32>
    %c8_i32_5 = arith.constant 8 : i32
    %12 = arith.muli %arg1, %c8_i32_5 : i32
    %13 = tpu.iota {dimensions = array<i32: 1>} : vector<8x8xi32>
    %14 = vector.broadcast %12 : i32 to vector<8x8xi32>
    %15 = arith.addi %14, %13 : vector<8x8xi32>
    %16 = arith.cmpi eq, %11, %15 : vector<8x8xi32>
    %c8_i32_6 = arith.constant 8 : i32
    %17 = vector.broadcast %c8_i32_6 : i32 to vector<8x8xi32>
    %18 = arith.cmpi slt, %15, %17 : vector<8x8xi32>
    %cst_7 = arith.constant dense<true> : vector<8x8xi1>
    %19 = arith.xori %16, %cst_7 : vector<8x8xi1>
    %20 = arith.andi %18, %19 : vector<8x8xi1>
    %cst_8 = arith.constant -1.000000e+30 : f32
    %21 = vector.broadcast %cst_8 : f32 to vector<8x8xf32>
    %22 = arith.select %20, %7, %21 : vector<8x8xi1>, vector<8x8xf32>
    %cst_9 = arith.constant dense<0xFF800000> : vector<8xf32>
    %23 = vector.multi_reduction <maximumf>, %22, %cst_9 [1] : vector<8x8xf32> to vector<8xf32>
    %24 = vector.shape_cast %23 : vector<8xf32> to vector<8x1xf32>
    %c0_10 = arith.constant 0 : index
    %c0_11 = arith.constant 0 : index
    %25 = vector.load %arg7[%c0_10, %c0_11] : memref<8x1xf32, #tpu.memory_space<vmem>>, vector<8x1xf32>
    %26 = arith.maximumf %25, %24 : vector<8x1xf32>
    %27 = vector.broadcast %26 : vector<8x1xf32> to vector<8x8xf32>
    %28 = arith.subf %22, %27 : vector<8x8xf32>
    %29 = math.exp %28 : vector<8x8xf32>
    %30 = arith.subf %25, %26 : vector<8x1xf32>
    %31 = math.exp %30 : vector<8x1xf32>
    %c0_12 = arith.constant 0 : index
    %c0_13 = arith.constant 0 : index
    %32 = vector.load %arg8[%c0_12, %c0_13] : memref<8x1xf32, #tpu.memory_space<vmem>>, vector<8x1xf32>
    %33 = arith.mulf %31, %32 : vector<8x1xf32>
    %cst_14 = arith.constant dense<0.000000e+00> : vector<8xf32>
    %34 = vector.multi_reduction <add>, %29, %cst_14 [1] : vector<8x8xf32> to vector<8xf32>
    %35 = vector.shape_cast %34 : vector<8xf32> to vector<8x1xf32>
    %36 = arith.addf %33, %35 : vector<8x1xf32>
    %c0_15 = arith.constant 0 : index
    %c0_16 = arith.constant 0 : index
    %37 = vector.load %arg8[%c0_15, %c0_16] : memref<8x1xf32, #tpu.memory_space<vmem>>, vector<8x1xf32>
    tpu.vector_store %arg8[%c0_15, %c0_16], %36 {strides = array<i32>} : memref<8x1xf32, #tpu.memory_space<vmem>>, vector<8x1xf32>,
    %c0_17 = arith.constant 0 : index
    %c0_18 = arith.constant 0 : index
    %38 = vector.load %arg7[%c0_17, %c0_18] : memref<8x1xf32, #tpu.memory_space<vmem>>, vector<8x1xf32>
    tpu.vector_store %arg7[%c0_17, %c0_18], %26 {strides = array<i32>} : memref<8x1xf32, #tpu.memory_space<vmem>>, vector<8x1xf32>,
    %c0_19 = arith.constant 0 : index
    %c0_20 = arith.constant 0 : index
    %39 = vector.load %arg4[%c0_19, %c0_20] : memref<8x1xi32, #tpu.memory_space<vmem>>, vector<8x1xi32>
    %c0_21 = arith.constant 0 : index
    %c0_22 = arith.constant 0 : index
    %40 = vector.load %arg5[%c0_21, %c0_22] : memref<1x8xi32, #tpu.memory_space<vmem>>, vector<1x8xi32>
    %41 = vector.broadcast %39 : vector<8x1xi32> to vector<8x8xi32>
    %42 = vector.broadcast %40 : vector<1x8xi32> to vector<8x8xi32>
    %43 = arith.cmpi eq, %41, %42 : vector<8x8xi32>
    %44 = arith.andi %43, %20 : vector<8x8xi1>
    %c0_23 = arith.constant 0 : index
    %c0_24 = arith.constant 0 : index
    %45 = vector.load %arg9[%c0_23, %c0_24] : memref<8x1xf32, #tpu.memory_space<vmem>>, vector<8x1xf32>
    %cst_25 = arith.constant 0.000000e+00 : f32
    %46 = vector.broadcast %cst_25 : f32 to vector<8x8xf32>
    %47 = arith.select %44, %7, %46 : vector<8x8xi1>, vector<8x8xf32>
    %cst_26 = arith.constant dense<0.000000e+00> : vector<8xf32>
    %48 = vector.multi_reduction <add>, %47, %cst_26 [1] : vector<8x8xf32> to vector<8xf32>
    %49 = vector.shape_cast %48 : vector<8xf32> to vector<8x1xf32>
    %50 = arith.addf %45, %49 : vector<8x1xf32>
    %c0_27 = arith.constant 0 : index
    %c0_28 = arith.constant 0 : index
    %51 = vector.load %arg9[%c0_27, %c0_28] : memref<8x1xf32, #tpu.memory_space<vmem>>, vector<8x1xf32>
    tpu.vector_store %arg9[%c0_27, %c0_28], %50 {strides = array<i32>} : memref<8x1xf32, #tpu.memory_space<vmem>>, vector<8x1xf32>,
    %c0_29 = arith.constant 0 : index
    %c0_30 = arith.constant 0 : index
    %52 = vector.load %arg10[%c0_29, %c0_30] : memref<8x1xf32, #tpu.memory_space<vmem>>, vector<8x1xf32>
    %53 = arith.extui %44 : vector<8x8xi1> to vector<8x8xi32>
    %54 = arith.sitofp %53 : vector<8x8xi32> to vector<8x8xf32>
    %cst_31 = arith.constant dense<0.000000e+00> : vector<8xf32>
    %55 = vector.multi_reduction <add>, %54, %cst_31 [1] : vector<8x8xf32> to vector<8xf32>
    %56 = vector.shape_cast %55 : vector<8xf32> to vector<8x1xf32>
    %57 = arith.addf %52, %56 : vector<8x1xf32>
    %c0_32 = arith.constant 0 : index
    %c0_33 = arith.constant 0 : index
    %58 = vector.load %arg10[%c0_32, %c0_33] : memref<8x1xf32, #tpu.memory_space<vmem>>, vector<8x1xf32>
    tpu.vector_store %arg10[%c0_32, %c0_33], %57 {strides = array<i32>} : memref<8x1xf32, #tpu.memory_space<vmem>>, vector<8x1xf32>,
    %c0_i32_34 = arith.constant 0 : i32
    %59 = arith.cmpi eq, %arg1, %c0_i32_34 : i32
    %60 = arith.extui %59 : i1 to i32
    %c0_i32_35 = arith.constant 0 : i32
    %61 = arith.cmpi ne, %60, %c0_i32_35 : i32
    scf.if %61 {
      %c0_36 = arith.constant 0 : index
      %c0_37 = arith.constant 0 : index
      %62 = vector.load %arg7[%c0_36, %c0_37] : memref<8x1xf32, #tpu.memory_space<vmem>>, vector<8x1xf32>
      %c0_38 = arith.constant 0 : index
      %c0_39 = arith.constant 0 : index
      %63 = vector.load %arg8[%c0_38, %c0_39] : memref<8x1xf32, #tpu.memory_space<vmem>>, vector<8x1xf32>
      %64 = math.log %63 : vector<8x1xf32>
      %65 = arith.addf %62, %64 : vector<8x1xf32>
      %c0_40 = arith.constant 0 : index
      %c0_41 = arith.constant 0 : index
      %66 = vector.load %arg10[%c0_40, %c0_41] : memref<8x1xf32, #tpu.memory_space<vmem>>, vector<8x1xf32>
      %67 = tpu.reciprocal %66 {approx = true} : vector<8x1xf32> -> vector<8x1xf32>
      %c0_42 = arith.constant 0 : index
      %c0_43 = arith.constant 0 : index
      %68 = vector.load %arg9[%c0_42, %c0_43] : memref<8x1xf32, #tpu.memory_space<vmem>>, vector<8x1xf32>
      %69 = arith.mulf %68, %67 : vector<8x1xf32>
      %70 = arith.subf %69, %65 : vector<8x1xf32>
      %cst_44 = arith.constant -1.000000e+00 : f32
      %71 = vector.broadcast %cst_44 : f32 to vector<8x1xf32>
      %72 = arith.mulf %71, %70 : vector<8x1xf32>
      %c0_45 = arith.constant 0 : index
      %c0_46 = arith.constant 0 : index
      %73 = vector.load %arg6[%c0_45, %c0_46] : memref<8x1xf32, #tpu.memory_space<vmem>>, vector<8x1xf32>
      tpu.vector_store %arg6[%c0_45, %c0_46], %72 {strides = array<i32>} : memref<8x1xf32, #tpu.memory_space<vmem>>, vector<8x1xf32>,
    } else {
    }
    return
  }
  func.func @transform_0(%arg0: i32, %arg1: i32) -> (i32, i32) {
    %c0_i32 = arith.constant 0 : i32
    %c0_i32_0 = arith.constant 0 : i32
    return %arg0, %c0_i32 : i32, i32
  }
  func.func @transform_1(%arg0: i32, %arg1: i32) -> (i32, i32) {
    %c0_i32 = arith.constant 0 : i32
    %c0_i32_0 = arith.constant 0 : i32
    return %arg1, %c0_i32 : i32, i32
  }
  func.func @transform_2(%arg0: i32, %arg1: i32) -> (i32, i32) {
    %c0_i32 = arith.constant 0 : i32
    %c0_i32_0 = arith.constant 0 : i32
    return %arg0, %c0_i32 : i32, i32
  }
  func.func @transform_3(%arg0: i32, %arg1: i32) -> (i32, i32) {
    %c0_i32 = arith.constant 0 : i32
    %c0_i32_0 = arith.constant 0 : i32
    return %c0_i32, %arg1 : i32, i32
  }
  func.func @transform_4(%arg0: i32, %arg1: i32) -> (i32, i32) {
    %c0_i32 = arith.constant 0 : i32
    %c0_i32_0 = arith.constant 0 : i32
    return %arg0, %c0_i32 : i32, i32
  }
}

</mosaic_0001>

<bundles_post_ra>
// kernel: tpu_custom_call.1
= control target key start
LH: loop header
LB: loop body
LE: loop exit
PB: predicated region body
PF: predicated region fallthrough
CT: control target
= control target key end

     0   :  { %9 = vsyncpa [#allocation7], 0  ;;  %s247_s15 = smov [#allocation6]   ;;  %s323_s0 = inlined_call_operand.vmem [shape: f32[8,128], index: 0, kind: input, shape index: {}]   ;;  %s324_s1 = inlined_call_operand.hbm [shape: f32[8,128], index: 1, kind: input, shape index: {}]   ;;  %s325_s2 = inlined_call_operand.vmem [shape: s32[8,1], index: 2, kind: input, shape index: {}]   ;;  %s326_s3 = inlined_call_operand.vmem [shape: s32[1,8], index: 3, kind: input, shape index: {}]   ;;  %s327_s4 = inlined_call_operand.vmem [shape: f32[8,1], index: 4, kind: output, shape index: {}]  }
   0x1   :  { %s18_s16 = sshll.u32 %s247_s15, 4  ;;  %s223_s19 = scalar_lea.hbm %s324_s1, 128  ;;  %s19_s16 = int_to_ptr.vmem [resolvable:$true] %s18_s16 }
   0x2   :  { %p224_p0 = scmp.ne.s32.totalorder %s324_s1, %s223_s19  ;;  %p227_p1 = scmp.lt.u32.totalorder %s223_s19, %s324_s1 }
   0x4   :  { %p229_p2 = pnand %p227_p1, %p224_p0 }
   0x6   :  { %232 = shalt.err (!%p229_p2)
}
   0x7   :  { %s233_s24 = scalar_lea.vmem %s19_s16, 128  ;;  %p238_p4 = scmp.lt.s32.totalorder %s19_s16, %s19_s16 }
   0x8   :  { %p234_p3 = scmp.ne.s32.totalorder %s19_s16, %s233_s24  ;;  %p239_p5 = scmp.lt.s32.totalorder %s233_s24, %s233_s24 }
   0xa   :  { %p240_p6 = por %p239_p5, %p238_p4 }
   0xc   :  { %p241_p7 = pnand %p240_p6, %p234_p3 }
   0xe   :  { %244 = shalt.err (!%p241_p7)
}
   0xf   :  { %21 = dma.hbm_to_vmem [thread:$0]  %s324_s1, 128, %s19_s16, [#allocation7]  }
  0x10   :  { %245 = dma.done.wait [#allocation7], 128  }
  0x11   :  { %246 = vsyncadd [#allocation7], 4294967168  ;;  %v248_v0 = vmov 0.0   ;;  %vm249_vm0 = vmmov 0   ;;  %v250_v1 = vmov 0   ;;  %v40_v2 = vld [vmem:[#allocation6] sm:$0xff]  ;;  %v112_v7 = vlaneseq }
  0x12   :  { %202 = vmatprep.subr.mxu0 %v248_v0  ;;  %204 = vmatprep.mubr.msk.f32.mxu0 %vm249_vm0, %v248_v0  ;;  %v38_v3 = vld [vmem:[%s323_s0] sm:$0xff]  ;;  %vm33_vm1 = vcmask 7168   ;;  %v251_v6 = vmov -1e+30   ;;  %vm252_vm4 = vmmov 1   ;;  %vm126_vm7 = vcmask 64512  }
  0x13   :  { %214 = vset.pattern.permute.xlu1 %v250_v1  ;;  %213 = vset.pattern.permute.xlu0 %v250_v1  ;;  %v152_v4 = vld [vmem:[%s325_s2] sm:$0xff]  ;;  %v39_v5 = vmul.f32 14.285714, %v38_v3  ;;  %34 = vst.msk [vmem:[#allocation2] sm:$0xff] %vm33_vm1, %v251_v6  ;;  %35 = vst.msk [vmem:[#allocation3] sm:$0xff] %vm33_vm1, %v248_v0  ;;  %v113_v8 = vshrl.u32 %v112_v7, 7 }
  0x14   :  { %203 = vmatpush3.xpose.msra.mxu0 %v40_v2  ;;  %155 = vperm.xlu1 %214, %v152_v4   ;;  %36 = vst.msk [vmem:[#allocation4] sm:$0xff] %vm33_vm1, %v248_v0  ;;  %37 = vst.msk [vmem:[#allocation5] sm:$0xff] %vm33_vm1, %v248_v0  ;;  %v118_v9 = vand.u32 127, %v112_v7  ;;  %v198_v22 = vld [vmem:[%s326_s3] ss:$0 sm:$0xff] }
  0x16   :  { %vm121_vm2 = vcmp.eq.s32.totalorder %v113_v8, %v118_v9  ;;  %vm122_vm3 = vcmp.lt.s32.totalorder %v118_v9, 8 }
  0x17   :  { %205 = vmatmul.mubr.f32.vlgmr.msra.gmra.mrb[0].mxu0 %v39_v5  ;;  %vm123_vm5 = vmxor %vm121_vm2, %vm252_vm4 }
  0x18   :  { %vm300_vm6 = vmand %vm122_vm3, %vm123_vm5 }
  0x1a   :  { %v130_v15 = vld [vmem:[#allocation2] sm:$0xff]  ;;  %v143_v32 = vld [vmem:[#allocation3] sm:$0xff] }
  0x1b   :  { %v170_v36 = vld [vmem:[#allocation5] sm:$0xff]  ;;  %v163_v39 = vld [vmem:[#allocation4] sm:$0xff] }
  0x93   :  { %v156_v23 = vpop.permute.xlu1 %155 }
  0x94   :  { %vm161_vm8 = vcmp.eq.s32.totalorder %v156_v23, %v198_v22 }
  0x95   :  { %vm162_vm9 = vmand %vm161_vm8, %vm300_vm6 }
  0x96   :  { %v199_v25 = vsel %vm162_vm9, 1.0, %v248_v0 }
  0x97   :  { %v173_v27 = vsel %vm126_vm7, %v199_v25, 0.0 }
  0xea   :  { %v107_v11 = vpop.f32.mrb[0].mxu0 }
  0xeb   :  { %v206_v12 = vpop.f32.mrb[1].mxu0  ;;  %v125_v13 = vsel %vm300_vm6, %v107_v11, -1e+30  ;;  %v164_v28 = vsel %vm162_vm9, %v107_v11, 0.0 }
  0xec   :  { %v127_v14 = vsel %vm126_vm7, %v125_v13, -inf  ;;  %v165_v29 = vsel %vm126_vm7, %v164_v28, 0.0 }
  0xed   :  { %128 = vmax.xlane.f32.xlu0 %v127_v14 }
 0x17a   :  { %v129_v16 = vpop.xlane.xlu0 %128 }
 0x17b   :  { %v131_v17 = vmax.f32 %v130_v15, %v129_v16 }
 0x17d   :  { %v140_v18 = vsub.f32 %v130_v15, %v131_v17  ;;  %151 = vst.msk [vmem:[#allocation2] sm:$0xff] %vm33_vm1, %v131_v17  ;;  %134 = vperm.xlu0 %213, %v131_v17  }
 0x17f   :  { %v141_v30 = vmul.f32 1.442695, %v140_v18 }
 0x184   :  { %v181_v47 = vld [vmem:[#allocation2] sm:$0xff] }
 0x1fc   :  { %v135_v19 = vpop.permute.xlu0 %134 }
 0x1fd   :  { %v137_v20 = vsub.f32 %v125_v13, %v135_v19 }
 0x1ff   :  { %v138_v21 = vmul.f32 1.442695, %v137_v20 }
 0x201   :  { %215 = vpow2.f32 %v138_v21 }
 0x202   :  { %217 = vpow2.f32 %v141_v30 }
 0x20b   :  { %v216_v24 = vpop.eup %215 }
 0x20c   :  { %v145_v26 = vsel %vm126_vm7, %v216_v24, 0.0  ;;  %v218_v31 = vpop.eup %217 }
 0x20d   :  { %146 = vadd.xlane.f32.xlu1 %v145_v26  ;;  %v144_v33 = vmul.f32 %v218_v31, %v143_v32 }
 0x211   :  { %174 = vadd.xlane.f32.xlu1 %v173_v27 }
 0x215   :  { %166 = vadd.xlane.f32.xlu1 %v165_v29 }
 0x29a   :  { %v147_v34 = vpop.xlane.xlu1 %146 }
 0x29b   :  { %v148_v35 = vadd.f32 %v147_v34, %v144_v33 }
 0x29d   :  { %150 = vst.msk [vmem:[#allocation3] sm:$0xff] %vm33_vm1, %v148_v35 }
 0x29e   :  { %v175_v37 = vpop.xlane.xlu1 %174 }
 0x29f   :  { %v176_v38 = vadd.f32 %v175_v37, %v170_v36 }
 0x2a1   :  { %177 = vst.msk [vmem:[#allocation5] sm:$0xff] %vm33_vm1, %v176_v38 }
 0x2a2   :  { %v167_v40 = vpop.xlane.xlu1 %166 }
 0x2a3   :  { %v168_v41 = vadd.f32 %v167_v40, %v163_v39 }
 0x2a4   :  { %v182_v42 = vld [vmem:[#allocation3] sm:$0xff] }
 0x2a5   :  { %219 = vlog2.f32 %v182_v42  ;;  %169 = vst.msk [vmem:[#allocation4] sm:$0xff] %vm33_vm1, %v168_v41 }
 0x2a8   :  { %v186_v43 = vld [vmem:[#allocation5] sm:$0xff] }
 0x2a9   :  { %221 = vrcp.f32 %v186_v43 }
 0x2ac   :  { %v188_v48 = vld [vmem:[#allocation4] sm:$0xff] }
 0x2af   :  { %v220_v44 = vpop.eup %219 }
 0x2b0   :  { %v184_v45 = vmul.f32 0.6931472, %v220_v44 }
 0x2b2   :  { %v185_v49 = vadd.f32 %v184_v45, %v181_v47 }
 0x2b3   :  { %v222_v46 = vpop.eup %221 }
 0x2b4   :  { %v189_v50 = vmul.f32 %v222_v46, %v188_v48 }
 0x2b6   :  { %v190_v51 = vsub.f32 %v189_v50, %v185_v49 }
 0x2b8   :  { %v191_v52 = vmul.f32 -1.0, %v190_v51 }
 0x2ba   :  { %192 = vst.msk [vmem:[%s327_s4] sm:$0xff] %vm33_vm1, %v191_v52 }
 0x2bb   :  { %197 = vsyncpa [#allocation7], 1 }

</bundles_post_ra>
